<compile_context>
chip_gen: v6e
topology: v6e:2x2x1
jax: 0.10.0
libtpu: 0.0.40
codegen_flags: <defaults>
</compile_context>

<pallas_src>
import functools
import math

import jax
import jax.numpy as jnp
from jax.experimental import pallas as pl
from jax.experimental.pallas import tpu as pltpu


def _round_up(x, m):
    return (x + m - 1) // m * m


def _layer_norm(x, gamma, beta, eps=1e-5):
    # torch nn.LayerNorm semantics: biased variance, eps inside rsqrt, affine.
    mu = jnp.mean(x, axis=-1, keepdims=True)
    xc = x - mu
    var = jnp.mean(xc * xc, axis=-1, keepdims=True)
    return xc * jax.lax.rsqrt(var + eps) * gamma + beta


def kernel_updator_kernel(
    x_ref,      # (R, C)   bf16  flattened input-feature rows for this tile
    e_ref,      # (R, P)   f32   one-hot row->proposal expansion
    pp_ref,     # (P, 2C)  f32   [param_in | norm_out(param_out)] per proposal
    wi_ref,     # (C, 2C)  bf16  input_layer weight
    wg_ref,     # (C, 2C)  bf16  fused [input_gate | update_gate] weight
    wfc_ref,    # (C, C)   bf16  fc_layer weight
    bias_ref,   # (8, 2C)  f32   rows: 0 b_inp, 1 b_gate(fused), 2 b_fc (first C lanes)
    ln_ref,     # (8, C)   f32   rows: g/b of input_norm_in, norm_in, input_norm_out, fc_norm
    out_ref,    # (R, C)   f32
    *, feat_channels,
):
    C = feat_channels
    bias = bias_ref[...]
    ln = ln_ref[...]

    # Per-row broadcast of param_in / normalized param_out: a tiny one-hot matmul
    # (contraction dim = #proposals) instead of padding S rows per proposal.
    prows = jnp.dot(e_ref[...], pp_ref[...],
                    preferred_element_type=jnp.float32)                     # (R, 2C)

    # input_layer on all real rows at once: bf16 operands, f32 accumulation.
    feats = jnp.dot(x_ref[...], wi_ref[...],
                    preferred_element_type=jnp.float32) + bias[0:1, :]      # (R, 2C)
    input_in, input_out = feats[:, :C], feats[:, C:]

    gate_feats = input_in * prows[:, :C]

    # Fused gate projections: single (R, C) @ (C, 2C) bf16 matmul, split at lane C.
    gates = jnp.dot(gate_feats.astype(jnp.bfloat16), wg_ref[...],
                    preferred_element_type=jnp.float32) + bias[1:2, :]
    input_gate = jax.nn.sigmoid(_layer_norm(gates[:, :C], ln[0:1, :], ln[1:2, :]))
    update_gate = jax.nn.sigmoid(_layer_norm(gates[:, C:], ln[2:3, :], ln[3:4, :]))

    input_out_n = _layer_norm(input_out, ln[4:5, :], ln[5:6, :])
    features = update_gate * prows[:, C:] + input_gate * input_out_n        # (R, C)

    # fc_layer -> fc_norm -> ReLU.
    features = jnp.dot(features.astype(jnp.bfloat16), wfc_ref[...],
                       preferred_element_type=jnp.float32) + bias[2:3, :C]
    features = _layer_norm(features, ln[6:7, :], ln[7:8, :])
    out_ref[...] = jnp.maximum(features, 0.0).astype(out_ref.dtype)


def kernel_updator_forward(update_feature, input_feature, p, *, target_rows=256):
    N, C = update_feature.shape
    S = input_feature.shape[1]
    Cout = p["w_fc"].shape[1]
    # Packed-parameter layout assumes in_channels == feat_channels == out_channels
    # (how KernelUpdator is used inside KernelUpdateHead) and lane-clean splits.
    assert Cout == C and p["w_dyn"].shape[0] == C and C % 128 == 0

    f32, bf16 = jnp.float32, jnp.bfloat16

    # ---- Row tiling: flatten real rows, pad only the total to the tile size. ----
    R_total = N * S
    # >= 2 grid steps when there is enough work so both v7x TensorCores are used;
    # target ~256 rows/step to fill the 256-wide MXU on v6e/v7x.
    num_steps = max(2, -(-R_total // target_rows)) if R_total > 16 else 1
    R_tile = _round_up(-(-R_total // num_steps), 8)
    R_pad = R_tile * num_steps
    P = _round_up(N, 8)                      # padded proposal count (sublane-aligned)

    # ---- Hoisted dynamic_layer + norm_out (tiny, poor MXU fill inside the grid). ----
    params = update_feature @ p["w_dyn"] + p["b_dyn"][0]                   # (N, 2C) f32
    param_in = params[:, :C]
    param_out_n = _layer_norm(params[:, C:], p["g_nout"], p["b_nout"])
    pp = jnp.pad(jnp.concatenate([param_in, param_out_n], axis=1),
                 ((0, P - N), (0, 0)))                                      # (P, 2C) f32

    # ---- Flattened bf16 activations (no per-proposal S padding). ----
    x_flat = input_feature.reshape(R_total, C)
    x_flat = jnp.pad(x_flat, ((0, R_pad - R_total), (0, 0))).astype(bf16)   # (R_pad, C)

    # Row -> proposal one-hot expansion; padded rows clamp to the last proposal
    # (their outputs are sliced off below, and zero rows are LayerNorm-safe).
    row_prop = jnp.minimum(jnp.arange(R_pad) // S, N - 1)
    expand = jax.nn.one_hot(row_prop, P, dtype=f32)                         # (R_pad, P)

    # ---- Packed weights / biases / LayerNorm params. ----
    w_inp_bf = p["w_inp"].astype(bf16)                                      # (C, 2C)
    w_gate_bf = jnp.concatenate([p["w_ig"], p["w_ug"]], axis=1).astype(bf16)  # (C, 2C)
    w_fc_bf = p["w_fc"].astype(bf16)                                        # (C, C)

    b_gate = jnp.concatenate([p["b_ig"], p["b_ug"]], axis=1)                # (1, 2C)
    b_fc_wide = jnp.pad(p["b_fc"], ((0, 0), (0, C)))                        # (1, 2C)
    bias_pack = jnp.pad(
        jnp.concatenate([p["b_inp"], b_gate, b_fc_wide], axis=0),
        ((0, 5), (0, 0)))                                                    # (8, 2C)

    ln_pack = jnp.concatenate(
        [p["g_inin"], p["b_inin"], p["g_nin"], p["b_nin"],
         p["g_inout"], p["b_inout"], p["g_fc"], p["b_fcn"]], axis=0)         # (8, C)

    def const(shape):
        # Constant operands (same block every grid step).
        # TODO(synk): pipeline_mode=pl.Buffered(1) once single-buffered constants are
        # confirmed supported on the target JAX version (saves one redundant buffer).
        return pl.BlockSpec(shape, lambda i: (0, 0))

    kernel = functools.partial(kernel_updator_kernel, feat_channels=C)

    out_flat = pl.pallas_call(
        kernel,
        out_shape=jax.ShapeDtypeStruct((R_pad, C), jnp.float32),
        grid_spec=pltpu.PrefetchScalarGridSpec(
            num_scalar_prefetch=0,
            grid=(num_steps,),
            in_specs=[
                pl.BlockSpec((R_tile, C), lambda i: (i, 0)),    # x rows (bf16)
                pl.BlockSpec((R_tile, P), lambda i: (i, 0)),    # one-hot expansion
                const((P, 2 * C)),                              # packed params
                const((C, 2 * C)),                              # w_inp
                const((C, 2 * C)),                              # fused gate weight
                const((C, C)),                                  # w_fc
                const((8, 2 * C)),                              # packed biases
                const((8, C)),                                  # packed LayerNorm params
            ],
            out_specs=pl.BlockSpec((R_tile, C), lambda i: (i, 0)),
        ),
        compiler_params=pltpu.CompilerParams(
            dimension_semantics=("parallel",),
            vmem_limit_bytes=48 * 1024 * 1024,   # stays within v7x's 64 MiB/TC
        ),
    )(x_flat, expand, pp, w_inp_bf, w_gate_bf, w_fc_bf, bias_pack, ln_pack)

    # NOTE: across KernelIterHead stages the caller could keep the flat padded layout
    # and slice/reshape once at the end instead of per stage.
    return out_flat[:R_total].reshape(N, S, C)


def init_params(key, in_channels, feat_channels, out_channels):
    """Deterministic synthetic init. Linear weights stored as (fan_in, fan_out)."""
    ks = jax.random.split(key, 5)

    def linear(k, fan_in, fan_out):
        kw, kb = jax.random.split(k)
        bound = 1.0 / math.sqrt(fan_in)
        w = jax.random.uniform(kw, (fan_in, fan_out), jnp.float32, -bound, bound)
        b = jax.random.uniform(kb, (1, fan_out), jnp.float32, -bound, bound)
        return w, b

    p = {}
    p["w_dyn"], p["b_dyn"] = linear(ks[0], in_channels, 2 * feat_channels)
    p["w_inp"], p["b_inp"] = linear(ks[1], in_channels, 2 * feat_channels)
    p["w_ig"], p["b_ig"] = linear(ks[2], in_channels, feat_channels)
    p["w_ug"], p["b_ug"] = linear(ks[3], in_channels, feat_channels)
    p["w_fc"], p["b_fc"] = linear(ks[4], feat_channels, out_channels)
    ones_c = jnp.ones((1, feat_channels), jnp.float32)
    zeros_c = jnp.zeros((1, feat_channels), jnp.float32)
    p["g_nin"], p["b_nin"] = ones_c, zeros_c
    p["g_nout"], p["b_nout"] = ones_c, zeros_c
    p["g_inin"], p["b_inin"] = ones_c, zeros_c
    p["g_inout"], p["b_inout"] = ones_c, zeros_c
    p["g_fc"] = jnp.ones((1, out_channels), jnp.float32)
    p["b_fcn"] = jnp.zeros((1, out_channels), jnp.float32)
    return p


def reference_forward(update_feature, input_feature, p, mm_dtype=jnp.float32):
    """Pure-JAX reference mirroring torch KernelUpdator.forward.

    mm_dtype controls the operand dtype of the three large projections, so a
    bf16-matched reference (same casts as the kernel, f32 accumulation) can be
    compared tightly against the Pallas output.
    """
    C = p["w_dyn"].shape[0]
    u = update_feature.reshape(-1, C)
    n = u.shape[0]
    x = input_feature.reshape(n, -1, C)

    def ln(v, g, b, eps=1e-5):
        mu = v.mean(-1, keepdims=True)
        var = ((v - mu) ** 2).mean(-1, keepdims=True)
        return (v - mu) / jnp.sqrt(var + eps) * g[0] + b[0]

    def mm(a, w):
        return jnp.dot(a.astype(mm_dtype), w.astype(mm_dtype),
                       preferred_element_type=jnp.float32)

    params = u @ p["w_dyn"] + p["b_dyn"][0]          # dynamic_layer stays f32 (hoisted)
    param_in = params[:, :C]
    param_out = params[:, C:]
    feats = mm(x, p["w_inp"]) + p["b_inp"][0]
    input_in = feats[..., :C]
    input_out = feats[..., C:]
    gate_feats = input_in * param_in[:, None, :]
    input_gate = jax.nn.sigmoid(ln(mm(gate_feats, p["w_ig"]) + p["b_ig"][0],
                                   p["g_inin"], p["b_inin"]))
    update_gate = jax.nn.sigmoid(ln(mm(gate_feats, p["w_ug"]) + p["b_ug"][0],
                                    p["g_nin"], p["b_nin"]))
    param_out_n = ln(param_out, p["g_nout"], p["b_nout"])
    input_out_n = ln(input_out, p["g_inout"], p["b_inout"])
    features = update_gate * param_out_n[:, None, :] + input_gate * input_out_n
    features = mm(features, p["w_fc"]) + p["b_fc"][0]
    features = ln(features, p["g_fc"], p["b_fcn"])
    return jax.nn.relu(features)


if __name__ == "__main__":
    # Small shapes: 4 proposals, channels=128, input_feat_shape=3 -> S = 9.
    N, C, S = 4, 128, 9
    key = jax.random.PRNGKey(0)
    k_p, k_u, k_x = jax.random.split(key, 3)

    params = init_params(k_p, in_channels=C, feat_channels=C, out_channels=C)
    update_feature = jax.random.normal(k_u, (N, C), jnp.float32)
    input_feature = jax.random.normal(k_x, (N, S, C), jnp.float32)

    fwd = jax.jit(kernel_updator_forward)
    out = jax.block_until_ready(fwd(update_feature, input_feature, params))
    assert out.shape == (N, S, C), out.shape

    # Matched-precision reference (bf16 matmul operands, f32 accumulation) for a
    # tight check of the fused kernel's math; bf16 storage makes a pure-f32
    # comparison only meaningful at much looser tolerances.
    ref = reference_forward(update_feature, input_feature, params, mm_dtype=jnp.bfloat16)
    assert jnp.allclose(out, ref, rtol=2e-2, atol=2e-2), float(jnp.abs(out - ref).max())

    print("KERNEL_OK")
</pallas_src>

<mosaic_0001>
module attributes {stable_mosaic.version = 11 : i64} {
  func.func @kernel_updator_kernel(%arg0: i32, %arg1: memref<24x128xbf16, #tpu.memory_space<vmem>>, %arg2: memref<24x8xf32, #tpu.memory_space<vmem>>, %arg3: memref<8x256xf32, #tpu.memory_space<vmem>>, %arg4: memref<128x256xbf16, #tpu.memory_space<vmem>>, %arg5: memref<128x256xbf16, #tpu.memory_space<vmem>>, %arg6: memref<128x128xbf16, #tpu.memory_space<vmem>>, %arg7: memref<8x256xf32, #tpu.memory_space<vmem>>, %arg8: memref<8x128xf32, #tpu.memory_space<vmem>>, %arg9: memref<24x128xf32, #tpu.memory_space<vmem>>) attributes {dimension_semantics = [#tpu.dimension_semantics<parallel>], iteration_bounds = array<i64: 2>, scalar_prefetch = 0 : i64, scratch_operands = 0 : i64, tpu.core_type = #tpu.core_type<tc>, window_params = [{transform_indices = @transform_0, window_bounds = array<i64: 24, 128>}, {transform_indices = @transform_1, window_bounds = array<i64: 24, 8>}, {pipeline_mode = #tpu.pipeline_mode<synchronous>, transform_indices = @transform_2, window_bounds = array<i64: 8, 256>}, {pipeline_mode = #tpu.pipeline_mode<synchronous>, transform_indices = @transform_3, window_bounds = array<i64: 128, 256>}, {pipeline_mode = #tpu.pipeline_mode<synchronous>, transform_indices = @transform_4, window_bounds = array<i64: 128, 256>}, {pipeline_mode = #tpu.pipeline_mode<synchronous>, transform_indices = @transform_5, window_bounds = array<i64: 128, 128>}, {pipeline_mode = #tpu.pipeline_mode<synchronous>, transform_indices = @transform_6, window_bounds = array<i64: 8, 256>}, {pipeline_mode = #tpu.pipeline_mode<synchronous>, transform_indices = @transform_7, window_bounds = array<i64: 8, 128>}, {transform_indices = @transform_8, window_bounds = array<i64: 24, 128>}]} {
    %c0 = arith.constant 0 : index
    %c0_0 = arith.constant 0 : index
    %0 = vector.load %arg7[%c0, %c0_0] : memref<8x256xf32, #tpu.memory_space<vmem>>, vector<8x256xf32>
    %c0_1 = arith.constant 0 : index
    %c0_2 = arith.constant 0 : index
    %1 = vector.load %arg8[%c0_1, %c0_2] : memref<8x128xf32, #tpu.memory_space<vmem>>, vector<8x128xf32>
    %c0_3 = arith.constant 0 : index
    %c0_4 = arith.constant 0 : index
    %2 = vector.load %arg2[%c0_3, %c0_4] : memref<24x8xf32, #tpu.memory_space<vmem>>, vector<24x8xf32>
    %c0_5 = arith.constant 0 : index
    %c0_6 = arith.constant 0 : index
    %3 = vector.load %arg3[%c0_5, %c0_6] : memref<8x256xf32, #tpu.memory_space<vmem>>, vector<8x256xf32>
    %cst = arith.constant dense<0.000000e+00> : vector<24x256xf32>
    %4 = tpu.matmul %2, %3, %cst {dimension_numbers = #tpu.dot_dimension_numbers<[1], [0], [0], [1], [0, 0, 1, 1], [], []>} : vector<24x8xf32>, vector<8x256xf32>, vector<24x256xf32> -> vector<24x256xf32>
    %c0_7 = arith.constant 0 : index
    %c0_8 = arith.constant 0 : index
    %5 = vector.load %arg1[%c0_7, %c0_8] : memref<24x128xbf16, #tpu.memory_space<vmem>>, vector<24x128xbf16>
    %c0_9 = arith.constant 0 : index
    %c0_10 = arith.constant 0 : index
    %6 = vector.load %arg4[%c0_9, %c0_10] : memref<128x256xbf16, #tpu.memory_space<vmem>>, vector<128x256xbf16>
    %cst_11 = arith.constant dense<0.000000e+00> : vector<24x256xf32>
    %7 = tpu.matmul %5, %6, %cst_11 {dimension_numbers = #tpu.dot_dimension_numbers<[1], [0], [0], [1], [0, 0, 1, 1], [], []>} : vector<24x128xbf16>, vector<128x256xbf16>, vector<24x256xf32> -> vector<24x256xf32>
    %8 = vector.extract_strided_slice %0 {offsets = [0, 0], sizes = [1, 256], strides = [1, 1]} : vector<8x256xf32> to vector<1x256xf32>
    %9 = vector.broadcast %8 : vector<1x256xf32> to vector<24x256xf32>
    %10 = arith.addf %7, %9 : vector<24x256xf32>
    %11 = vector.extract_strided_slice %10 {offsets = [0, 0], sizes = [24, 128], strides = [1, 1]} : vector<24x256xf32> to vector<24x128xf32>
    %12 = vector.extract_strided_slice %10 {offsets = [0, 128], sizes = [24, 128], strides = [1, 1]} : vector<24x256xf32> to vector<24x128xf32>
    %13 = vector.extract_strided_slice %4 {offsets = [0, 0], sizes = [24, 128], strides = [1, 1]} : vector<24x256xf32> to vector<24x128xf32>
    %14 = arith.mulf %11, %13 : vector<24x128xf32>
    %15 = arith.truncf %14 : vector<24x128xf32> to vector<24x128xbf16>
    %c0_12 = arith.constant 0 : index
    %c0_13 = arith.constant 0 : index
    %16 = vector.load %arg5[%c0_12, %c0_13] : memref<128x256xbf16, #tpu.memory_space<vmem>>, vector<128x256xbf16>
    %cst_14 = arith.constant dense<0.000000e+00> : vector<24x256xf32>
    %17 = tpu.matmul %15, %16, %cst_14 {dimension_numbers = #tpu.dot_dimension_numbers<[1], [0], [0], [1], [0, 0, 1, 1], [], []>} : vector<24x128xbf16>, vector<128x256xbf16>, vector<24x256xf32> -> vector<24x256xf32>
    %18 = vector.extract_strided_slice %0 {offsets = [1, 0], sizes = [1, 256], strides = [1, 1]} : vector<8x256xf32> to vector<1x256xf32>
    %19 = vector.broadcast %18 : vector<1x256xf32> to vector<24x256xf32>
    %20 = arith.addf %17, %19 : vector<24x256xf32>
    %21 = vector.extract_strided_slice %20 {offsets = [0, 0], sizes = [24, 128], strides = [1, 1]} : vector<24x256xf32> to vector<24x128xf32>
    %22 = vector.extract_strided_slice %1 {offsets = [0, 0], sizes = [1, 128], strides = [1, 1]} : vector<8x128xf32> to vector<1x128xf32>
    %23 = vector.extract_strided_slice %1 {offsets = [1, 0], sizes = [1, 128], strides = [1, 1]} : vector<8x128xf32> to vector<1x128xf32>
    %cst_15 = arith.constant dense<0.000000e+00> : vector<24xf32>
    %24 = vector.multi_reduction <add>, %21, %cst_15 [1] : vector<24x128xf32> to vector<24xf32>
    %25 = vector.shape_cast %24 : vector<24xf32> to vector<24x1xf32>
    %cst_16 = arith.constant 1.280000e+02 : f32
    %26 = vector.broadcast %cst_16 : f32 to vector<24x1xf32>
    %27 = arith.divf %25, %26 : vector<24x1xf32>
    %28 = vector.broadcast %27 : vector<24x1xf32> to vector<24x128xf32>
    %29 = arith.subf %21, %28 : vector<24x128xf32>
    %30 = arith.mulf %29, %29 : vector<24x128xf32>
    %cst_17 = arith.constant dense<0.000000e+00> : vector<24xf32>
    %31 = vector.multi_reduction <add>, %30, %cst_17 [1] : vector<24x128xf32> to vector<24xf32>
    %32 = vector.shape_cast %31 : vector<24xf32> to vector<24x1xf32>
    %cst_18 = arith.constant 1.280000e+02 : f32
    %33 = vector.broadcast %cst_18 : f32 to vector<24x1xf32>
    %34 = arith.divf %32, %33 : vector<24x1xf32>
    %cst_19 = arith.constant 9.99999974E-6 : f32
    %35 = vector.broadcast %cst_19 : f32 to vector<24x1xf32>
    %36 = arith.addf %34, %35 : vector<24x1xf32>
    %37 = math.rsqrt %36 : vector<24x1xf32>
    %38 = vector.broadcast %37 : vector<24x1xf32> to vector<24x128xf32>
    %39 = arith.mulf %29, %38 : vector<24x128xf32>
    %40 = vector.broadcast %22 : vector<1x128xf32> to vector<24x128xf32>
    %41 = arith.mulf %39, %40 : vector<24x128xf32>
    %42 = vector.broadcast %23 : vector<1x128xf32> to vector<24x128xf32>
    %43 = arith.addf %41, %42 : vector<24x128xf32>
    %44 = arith.negf %43 : vector<24x128xf32>
    %45 = math.exp %44 : vector<24x128xf32>
    %cst_20 = arith.constant 1.000000e+00 : f32
    %46 = vector.broadcast %cst_20 : f32 to vector<24x128xf32>
    %47 = arith.addf %46, %45 : vector<24x128xf32>
    %48 = arith.divf %46, %47 : vector<24x128xf32>
    %49 = vector.extract_strided_slice %20 {offsets = [0, 128], sizes = [24, 128], strides = [1, 1]} : vector<24x256xf32> to vector<24x128xf32>
    %50 = vector.extract_strided_slice %1 {offsets = [2, 0], sizes = [1, 128], strides = [1, 1]} : vector<8x128xf32> to vector<1x128xf32>
    %51 = vector.extract_strided_slice %1 {offsets = [3, 0], sizes = [1, 128], strides = [1, 1]} : vector<8x128xf32> to vector<1x128xf32>
    %cst_21 = arith.constant dense<0.000000e+00> : vector<24xf32>
    %52 = vector.multi_reduction <add>, %49, %cst_21 [1] : vector<24x128xf32> to vector<24xf32>
    %53 = vector.shape_cast %52 : vector<24xf32> to vector<24x1xf32>
    %cst_22 = arith.constant 1.280000e+02 : f32
    %54 = vector.broadcast %cst_22 : f32 to vector<24x1xf32>
    %55 = arith.divf %53, %54 : vector<24x1xf32>
    %56 = vector.broadcast %55 : vector<24x1xf32> to vector<24x128xf32>
    %57 = arith.subf %49, %56 : vector<24x128xf32>
    %58 = arith.mulf %57, %57 : vector<24x128xf32>
    %cst_23 = arith.constant dense<0.000000e+00> : vector<24xf32>
    %59 = vector.multi_reduction <add>, %58, %cst_23 [1] : vector<24x128xf32> to vector<24xf32>
    %60 = vector.shape_cast %59 : vector<24xf32> to vector<24x1xf32>
    %cst_24 = arith.constant 1.280000e+02 : f32
    %61 = vector.broadcast %cst_24 : f32 to vector<24x1xf32>
    %62 = arith.divf %60, %61 : vector<24x1xf32>
    %cst_25 = arith.constant 9.99999974E-6 : f32
    %63 = vector.broadcast %cst_25 : f32 to vector<24x1xf32>
    %64 = arith.addf %62, %63 : vector<24x1xf32>
    %65 = math.rsqrt %64 : vector<24x1xf32>
    %66 = vector.broadcast %65 : vector<24x1xf32> to vector<24x128xf32>
    %67 = arith.mulf %57, %66 : vector<24x128xf32>
    %68 = vector.broadcast %50 : vector<1x128xf32> to vector<24x128xf32>
    %69 = arith.mulf %67, %68 : vector<24x128xf32>
    %70 = vector.broadcast %51 : vector<1x128xf32> to vector<24x128xf32>
    %71 = arith.addf %69, %70 : vector<24x128xf32>
    %72 = arith.negf %71 : vector<24x128xf32>
    %73 = math.exp %72 : vector<24x128xf32>
    %cst_26 = arith.constant 1.000000e+00 : f32
    %74 = vector.broadcast %cst_26 : f32 to vector<24x128xf32>
    %75 = arith.addf %74, %73 : vector<24x128xf32>
    %76 = arith.divf %74, %75 : vector<24x128xf32>
    %77 = vector.extract_strided_slice %1 {offsets = [4, 0], sizes = [1, 128], strides = [1, 1]} : vector<8x128xf32> to vector<1x128xf32>
    %78 = vector.extract_strided_slice %1 {offsets = [5, 0], sizes = [1, 128], strides = [1, 1]} : vector<8x128xf32> to vector<1x128xf32>
    %cst_27 = arith.constant dense<0.000000e+00> : vector<24xf32>
    %79 = vector.multi_reduction <add>, %12, %cst_27 [1] : vector<24x128xf32> to vector<24xf32>
    %80 = vector.shape_cast %79 : vector<24xf32> to vector<24x1xf32>
    %cst_28 = arith.constant 1.280000e+02 : f32
    %81 = vector.broadcast %cst_28 : f32 to vector<24x1xf32>
    %82 = arith.divf %80, %81 : vector<24x1xf32>
    %83 = vector.broadcast %82 : vector<24x1xf32> to vector<24x128xf32>
    %84 = arith.subf %12, %83 : vector<24x128xf32>
    %85 = arith.mulf %84, %84 : vector<24x128xf32>
    %cst_29 = arith.constant dense<0.000000e+00> : vector<24xf32>
    %86 = vector.multi_reduction <add>, %85, %cst_29 [1] : vector<24x128xf32> to vector<24xf32>
    %87 = vector.shape_cast %86 : vector<24xf32> to vector<24x1xf32>
    %cst_30 = arith.constant 1.280000e+02 : f32
    %88 = vector.broadcast %cst_30 : f32 to vector<24x1xf32>
    %89 = arith.divf %87, %88 : vector<24x1xf32>
    %cst_31 = arith.constant 9.99999974E-6 : f32
    %90 = vector.broadcast %cst_31 : f32 to vector<24x1xf32>
    %91 = arith.addf %89, %90 : vector<24x1xf32>
    %92 = math.rsqrt %91 : vector<24x1xf32>
    %93 = vector.broadcast %92 : vector<24x1xf32> to vector<24x128xf32>
    %94 = arith.mulf %84, %93 : vector<24x128xf32>
    %95 = vector.broadcast %77 : vector<1x128xf32> to vector<24x128xf32>
    %96 = arith.mulf %94, %95 : vector<24x128xf32>
    %97 = vector.broadcast %78 : vector<1x128xf32> to vector<24x128xf32>
    %98 = arith.addf %96, %97 : vector<24x128xf32>
    %99 = vector.extract_strided_slice %4 {offsets = [0, 128], sizes = [24, 128], strides = [1, 1]} : vector<24x256xf32> to vector<24x128xf32>
    %100 = arith.mulf %76, %99 : vector<24x128xf32>
    %101 = arith.mulf %48, %98 : vector<24x128xf32>
    %102 = arith.addf %100, %101 : vector<24x128xf32>
    %103 = arith.truncf %102 : vector<24x128xf32> to vector<24x128xbf16>
    %c0_32 = arith.constant 0 : index
    %c0_33 = arith.constant 0 : index
    %104 = vector.load %arg6[%c0_32, %c0_33] : memref<128x128xbf16, #tpu.memory_space<vmem>>, vector<128x128xbf16>
    %cst_34 = arith.constant dense<0.000000e+00> : vector<24x128xf32>
    %105 = tpu.matmul %103, %104, %cst_34 {dimension_numbers = #tpu.dot_dimension_numbers<[1], [0], [0], [1], [0, 0, 1, 1], [], []>} : vector<24x128xbf16>, vector<128x128xbf16>, vector<24x128xf32> -> vector<24x128xf32>
    %106 = vector.extract_strided_slice %0 {offsets = [2, 0], sizes = [1, 128], strides = [1, 1]} : vector<8x256xf32> to vector<1x128xf32>
    %107 = vector.broadcast %106 : vector<1x128xf32> to vector<24x128xf32>
    %108 = arith.addf %105, %107 : vector<24x128xf32>
    %109 = vector.extract_strided_slice %1 {offsets = [6, 0], sizes = [1, 128], strides = [1, 1]} : vector<8x128xf32> to vector<1x128xf32>
    %110 = vector.extract_strided_slice %1 {offsets = [7, 0], sizes = [1, 128], strides = [1, 1]} : vector<8x128xf32> to vector<1x128xf32>
    %cst_35 = arith.constant dense<0.000000e+00> : vector<24xf32>
    %111 = vector.multi_reduction <add>, %108, %cst_35 [1] : vector<24x128xf32> to vector<24xf32>
    %112 = vector.shape_cast %111 : vector<24xf32> to vector<24x1xf32>
    %cst_36 = arith.constant 1.280000e+02 : f32
    %113 = vector.broadcast %cst_36 : f32 to vector<24x1xf32>
    %114 = arith.divf %112, %113 : vector<24x1xf32>
    %115 = vector.broadcast %114 : vector<24x1xf32> to vector<24x128xf32>
    %116 = arith.subf %108, %115 : vector<24x128xf32>
    %117 = arith.mulf %116, %116 : vector<24x128xf32>
    %cst_37 = arith.constant dense<0.000000e+00> : vector<24xf32>
    %118 = vector.multi_reduction <add>, %117, %cst_37 [1] : vector<24x128xf32> to vector<24xf32>
    %119 = vector.shape_cast %118 : vector<24xf32> to vector<24x1xf32>
    %cst_38 = arith.constant 1.280000e+02 : f32
    %120 = vector.broadcast %cst_38 : f32 to vector<24x1xf32>
    %121 = arith.divf %119, %120 : vector<24x1xf32>
    %cst_39 = arith.constant 9.99999974E-6 : f32
    %122 = vector.broadcast %cst_39 : f32 to vector<24x1xf32>
    %123 = arith.addf %121, %122 : vector<24x1xf32>
    %124 = math.rsqrt %123 : vector<24x1xf32>
    %125 = vector.broadcast %124 : vector<24x1xf32> to vector<24x128xf32>
    %126 = arith.mulf %116, %125 : vector<24x128xf32>
    %127 = vector.broadcast %109 : vector<1x128xf32> to vector<24x128xf32>
    %128 = arith.mulf %126, %127 : vector<24x128xf32>
    %129 = vector.broadcast %110 : vector<1x128xf32> to vector<24x128xf32>
    %130 = arith.addf %128, %129 : vector<24x128xf32>
    %cst_40 = arith.constant 0.000000e+00 : f32
    %131 = vector.broadcast %cst_40 : f32 to vector<24x128xf32>
    %132 = arith.maximumf %130, %131 : vector<24x128xf32>
    %c0_41 = arith.constant 0 : index
    %c0_42 = arith.constant 0 : index
    %133 = vector.load %arg9[%c0_41, %c0_42] : memref<24x128xf32, #tpu.memory_space<vmem>>, vector<24x128xf32>
    tpu.vector_store %arg9[%c0_41, %c0_42], %132 {strides = array<i32>} : memref<24x128xf32, #tpu.memory_space<vmem>>, vector<24x128xf32>,
    return
  }
  func.func @transform_0(%arg0: i32) -> (i32, i32) {
    %c0_i32 = arith.constant 0 : i32
    %c0_i32_0 = arith.constant 0 : i32
    return %arg0, %c0_i32 : i32, i32
  }
  func.func @transform_1(%arg0: i32) -> (i32, i32) {
    %c0_i32 = arith.constant 0 : i32
    %c0_i32_0 = arith.constant 0 : i32
    return %arg0, %c0_i32 : i32, i32
  }
  func.func @transform_2(%arg0: i32) -> (i32, i32) {
    %c0_i32 = arith.constant 0 : i32
    %c0_i32_0 = arith.constant 0 : i32
    %c0_i32_1 = arith.constant 0 : i32
    return %c0_i32, %c0_i32_0 : i32, i32
  }
  func.func @transform_3(%arg0: i32) -> (i32, i32) {
    %c0_i32 = arith.constant 0 : i32
    %c0_i32_0 = arith.constant 0 : i32
    %c0_i32_1 = arith.constant 0 : i32
    return %c0_i32, %c0_i32_0 : i32, i32
  }
  func.func @transform_4(%arg0: i32) -> (i32, i32) {
    %c0_i32 = arith.constant 0 : i32
    %c0_i32_0 = arith.constant 0 : i32
    %c0_i32_1 = arith.constant 0 : i32
    return %c0_i32, %c0_i32_0 : i32, i32
  }
  func.func @transform_5(%arg0: i32) -> (i32, i32) {
    %c0_i32 = arith.constant 0 : i32
    %c0_i32_0 = arith.constant 0 : i32
    %c0_i32_1 = arith.constant 0 : i32
    return %c0_i32, %c0_i32_0 : i32, i32
  }
  func.func @transform_6(%arg0: i32) -> (i32, i32) {
    %c0_i32 = arith.constant 0 : i32
    %c0_i32_0 = arith.constant 0 : i32
    %c0_i32_1 = arith.constant 0 : i32
    return %c0_i32, %c0_i32_0 : i32, i32
  }
  func.func @transform_7(%arg0: i32) -> (i32, i32) {
    %c0_i32 = arith.constant 0 : i32
    %c0_i32_0 = arith.constant 0 : i32
    %c0_i32_1 = arith.constant 0 : i32
    return %c0_i32, %c0_i32_0 : i32, i32
  }
  func.func @transform_8(%arg0: i32) -> (i32, i32) {
    %c0_i32 = arith.constant 0 : i32
    %c0_i32_0 = arith.constant 0 : i32
    return %arg0, %c0_i32 : i32, i32
  }
}

</mosaic_0001>

<bundles_post_ra>
// kernel: kernel_updator_forward.1
= control target key start
LH: loop header
LB: loop body
LE: loop exit
PB: predicated region body
PF: predicated region fallthrough
CT: control target
= control target key end

     0   :  { %s1449_s27 = smov 0   ;;  %s1728_s0 = inlined_call_operand.vmem [shape: bf16[48,128], index: 0, kind: input, shape index: {}]   ;;  %s1729_s1 = inlined_call_operand.vmem [shape: f32[48,8], index: 1, kind: input, shape index: {}]   ;;  %s1730_s2 = inlined_call_operand.vmem [shape: f32[8,256], index: 2, kind: input, shape index: {}]   ;;  %s1731_s3 = inlined_call_operand.vmem [shape: bf16[128,256], index: 3, kind: input, shape index: {}]   ;;  %s1732_s4 = inlined_call_operand.vmem [shape: bf16[128,256], index: 4, kind: input, shape index: {}]   ;;  %s1733_s5 = inlined_call_operand.vmem [shape: bf16[128,128], index: 5, kind: input, shape index: {}]   ;;  %s1734_s6 = inlined_call_operand.vmem [shape: f32[8,256], index: 6, kind: input, shape index: {}]   ;;  %s1735_s7 = inlined_call_operand.vmem [shape: f32[8,128], index: 7, kind: input, shape index: {}]   ;;  %s1736_s8 = inlined_call_operand.vmem [shape: f32[48,128], index: 8, kind: output, shape index: {}]  }
   0x1 LB: > { %s1187_s28 = sadd.s32 4294967295, %s1400_s27   ;;  %p1191_p0 = scmp.ge.s32.totalorder %s1400_s27, 1  ;;  %s1400_s27 = sphi %s1449_s27, %s18_s27  }
   0x2   : > { %p274_p1 = scmp.lt.s32.totalorder %s1400_s27, 3 }
   0x4   : > { %p275_p2 = pnand %p1191_p0, %p274_p1 }
   0x5   : > { %s313_s11 = smul.u32 (!%p275_p2), 3, %s1187_s28 }
   0x6   : > { %278 = sbr.rel (%p275_p2) target bundleno = 1310 (0x51e), region = 52 }
   0x7   : > { %p314_p3 = scmp.lt.s32.totalorder (!%p275_p2), %s313_s11, 5 }
   0xb   : > { %v1288_v0 = vld [vmem:[%s1731_s3 + $0x74] ss:$8 sps:$4 sm:$0xff]   ;;  %v1290_v1 = vld [vmem:[%s1731_s3 + $0x70] ss:$8 sps:$4 sm:$0xff]   ;;  %v1402_v2 = vmov 0.0   ;;  %v1403_v3 = vmov 0   ;;  %v452_v41 = vlaneseq }
   0xc   : > { %414 = vmatprep.mubr.f32.mxu0 %v1402_v2  ;;  %582 = vmatprep.mubr.bf16.mxu1 %v1403_v3  ;;  %v1291_v4 = vld [vmem:[%s1731_s3 + $0x64] ss:$8 sps:$4 sm:$0xff]   ;;  %v1293_v5 = vld [vmem:[%s1731_s3 + $0x60] ss:$8 sps:$4 sm:$0xff]   ;;  %v1294_v6 = vld [vmem:[%s1731_s3 + $0x54] ss:$8 sps:$4 sm:$0xff]  }
   0xd   : > { %550 = vmatprep.subr.bf16.mxu1 %v1288_v0  ;;  %s1738_s11 = smov (!%p314_p3, %s313_s11), 5  ;;  %v1296_v7 = vld [vmem:[%s1731_s3 + $0x50] ss:$8 sps:$4 sm:$0xff]   ;;  %v1297_v8 = vld [vmem:[%s1731_s3 + $0x44] ss:$8 sps:$4 sm:$0xff]   ;;  %vm340_vm0 = vcmask 64512  }
   0xe   : > { %551 = vmatpush1.bf16.msra.mxu1 %v1290_v1  ;;  %s1193_s20 = sshll.u32 %s1738_s11, 3  ;;  %s1192_s26 = sshll.u32 %s1738_s11, 2  ;;  %v1299_v9 = vld [vmem:[%s1731_s3 + $0x40] ss:$8 sps:$4 sm:$0xff]   ;;  %v1300_v13 = vld [vmem:[%s1731_s3 + $0x34] ss:$8 sps:$4 sm:$0xff]  }
   0xf   : > { %552 = vmatprep.subr.bf16.mxu1 %v1291_v4  ;;  %s323_s25 = scalar_lea.vmem %s1729_s1, %s1193_s20  ;;  %v339_v10 = vld [vmem:[%s1730_s2 + $0x8] sm:$0xff]  ;;  %s1497_s13 = scalar_lea.vmem %s1728_s0, %s1192_s26  ;;  %v338_v11 = vld [vmem:[%s1730_s2] sm:$0xff]  ;;  %v1302_v14 = vld [vmem:[%s1731_s3 + $0x30] ss:$8 sps:$4 sm:$0xff]   ;;  %v1581_v42 = vshrl.u32 %v452_v41, 7 }
  0x10   : > { %380 = vmatprep.subr.mxu0 %v339_v10  ;;  %v335_v12 = vld [vmem:[%s323_s25] sm:$0xff]  ;;  %v336_v15 = vld [vmem:[%s323_s25 + $0x8] sm:$0xff]  ;;  %v1314_v16 = vld [vmem:[%s1732_s4 + $0x70] ss:$8 sps:$4 sm:$0xff]   ;;  %s329_s15 = scalar_lea.vmem %s1736_s8, %s1193_s20 }
  0x11   : > { %381 = vmatpush1.msra.mxu0 %v338_v11  ;;  %v1316_v17 = vld [vmem:[%s1732_s4 + $0x74] ss:$8 sps:$4 sm:$0xff]   ;;  %v1303_v18 = vld [vmem:[%s1731_s3 + $0x24] ss:$8 sps:$4 sm:$0xff]   ;;  %v1305_v20 = vld [vmem:[%s1731_s3 + $0x20] ss:$8 sps:$4 sm:$0xff]  }
  0x12   : > { %553 = vmatpush1.bf16.msra.mxu1 %v1293_v5  ;;  %1195 = vmatmul.mubr.msk.f32.vlgmr.msra.gmra.mxu0 %vm340_vm0, %v335_v12  ;;  %v1319_v19 = vld [vmem:[%s1732_s4 + $0x64] ss:$8 sps:$4 sm:$0xff]   ;;  %v337_v21 = vld [vmem:[%s323_s25 + $0x10] sm:$0xff]  ;;  %v1317_v22 = vld [vmem:[%s1732_s4 + $0x60] ss:$8 sps:$4 sm:$0xff]   ;;  %v1584_v44 = vsub.s32 0, %v1581_v42 }
  0x13   : > { %554 = vmatprep.subr.bf16.mxu1 %v1294_v6  ;;  %420 = vmatprep.mubr.f32.mxu0 %v1402_v2  ;;  %v1322_v23 = vld [vmem:[%s1732_s4 + $0x54] ss:$8 sps:$4 sm:$0xff]   ;;  %v1308_v25 = vld [vmem:[%s1731_s3 + $0x10] ss:$8 sps:$4 sm:$0xff]   ;;  %v1325_v27 = vld [vmem:[%s1732_s4 + $0x44] ss:$8 sps:$4 sm:$0xff]  }
  0x14   : > { %710 = vmatprep.subr.bf16.mxu0 %v1316_v17  ;;  %v1306_v24 = vld [vmem:[%s1731_s3 + $0x14] ss:$8 sps:$4 sm:$0xff]   ;;  %v1320_v26 = vld [vmem:[%s1732_s4 + $0x50] ss:$8 sps:$4 sm:$0xff]   ;;  %v1309_v28 = vld [vmem:[%s1731_s3 + $0x4] ss:$8 sps:$4 sm:$0xff]  }
  0x15   : > { %711 = vmatpush1.bf16.msra.mxu0 %v1314_v16  ;;  %v1323_v29 = vld [vmem:[%s1732_s4 + $0x40] ss:$8 sps:$4 sm:$0xff]   ;;  %v1328_v31 = vld [vmem:[%s1732_s4 + $0x34] ss:$8 sps:$4 sm:$0xff]   ;;  %v1326_v33 = vld [vmem:[%s1732_s4 + $0x30] ss:$8 sps:$4 sm:$0xff]  }
  0x16   : > { %555 = vmatpush1.bf16.msra.mxu1 %v1296_v7  ;;  %1196 = vmatmul.mubr.msk.f32.gmra.mxu0 %vm340_vm0, %v336_v15  ;;  %v1311_v30 = vld [vmem:[%s1731_s3] ss:$8 sps:$4 sm:$0xff]   ;;  %v1331_v34 = vld [vmem:[%s1732_s4 + $0x24] ss:$8 sps:$4 sm:$0xff]   ;;  %v1334_v37 = vld [vmem:[%s1732_s4 + $0x14] ss:$8 sps:$4 sm:$0xff]  }
  0x17   : > { %556 = vmatprep.subr.bf16.mxu1 %v1297_v8  ;;  %426 = vmatprep.mubr.f32.mxu0 %v1402_v2  ;;  %v1312_v32 = vld [vmem:[%s1497_s13] sm:$0xff]   ;;  %v1313_v36 = vld [vmem:[%s1497_s13 + $0x8] ss:$0 sps:$4 sm:$0xff]   ;;  %v1332_v38 = vld [vmem:[%s1732_s4 + $0x10] ss:$8 sps:$4 sm:$0xff]  }
  0x18   : > { %712 = vmatprep.subr.bf16.mxu0 %v1319_v19  ;;  %v1329_v35 = vld [vmem:[%s1732_s4 + $0x20] ss:$8 sps:$4 sm:$0xff]   ;;  %v1337_v39 = vld [vmem:[%s1732_s4 + $0x4] ss:$8 sps:$4 sm:$0xff]  }
  0x19   : > { %713 = vmatpush1.bf16.msra.mxu0 %v1317_v22  ;;  %v1335_v40 = vld [vmem:[%s1732_s4] ss:$8 sps:$4 sm:$0xff]  }
  0x1a   : > { %557 = vmatpush1.bf16.msra.mxu1 %v1299_v9  ;;  %1197 = vmatmul.mubr.msk.f32.gmra.mxu0 %vm340_vm0, %v337_v21  ;;  %v1589_v45 = vld [vmem:[%s1734_s6] sm:$0xff]  ;;  %v333_v46 = vld [vmem:[%s1734_s6 + $0x8] sm:$0xff]  ;;  %v1609_v9 = vsub.s32 1, %v1581_v42 }
  0x1b   : > { %558 = vmatprep.subr.bf16.mxu1 %v1300_v13  ;;  %742 = vmatprep.mubr.bf16.mxu0 %v1403_v3  ;;  %v455_v48 = vrot.slane %v1589_v45, %v1584_v44  ;;  %v459_v49 = vrot.slane %v333_v46, %v1584_v44 }
  0x1c   : > { %714 = vmatprep.subr.bf16.mxu0 %v1322_v23  ;;  %v625_v10 = vrot.slane %v1589_v45, %v1609_v9  ;;  %v629_v12 = vrot.slane %v333_v46, %v1609_v9 }
  0x1d   : > { %715 = vmatpush1.bf16.msra.mxu0 %v1320_v26 }
  0x1e   : > { %559 = vmatpush1.bf16.msra.mxu1 %v1302_v14  ;;  %716 = vmatprep.subr.bf16.mxu0 %v1325_v27 }
  0x1f   : > { %560 = vmatprep.subr.bf16.mxu1 %v1303_v18 }
  0x21   : > { %717 = vmatpush1.bf16.msra.mxu0 %v1323_v29 }
  0x22   : > { %561 = vmatpush1.bf16.msra.mxu1 %v1305_v20  ;;  %718 = vmatprep.subr.bf16.mxu0 %v1328_v31 }
  0x23   : > { %562 = vmatprep.subr.bf16.mxu1 %v1306_v24 }
  0x25   : > { %719 = vmatpush1.bf16.msra.mxu0 %v1326_v33 }
  0x26   : > { %563 = vmatpush1.bf16.msra.mxu1 %v1308_v25  ;;  %720 = vmatprep.subr.bf16.mxu0 %v1331_v34 }
  0x27   : > { %564 = vmatprep.subr.bf16.mxu1 %v1309_v28 }
  0x29   : > { %721 = vmatpush1.bf16.msra.mxu0 %v1329_v35 }
  0x2a   : > { %565 = vmatpush1.bf16.msra.mxu1 %v1311_v30  ;;  %722 = vmatprep.subr.bf16.mxu0 %v1334_v37 }
  0x2d   : > { %583 = vmatmul.mubr.bf16.vlgmr.msra.gmra.mxu1 %v1312_v32  ;;  %723 = vmatpush1.bf16.msra.mxu0 %v1332_v38 }
  0x2e   : > { %592 = vmatprep.mubr.bf16.mxu1 %v1403_v3  ;;  %724 = vmatprep.subr.bf16.mxu0 %v1337_v39 }
  0x31   : > { %725 = vmatpush1.bf16.msra.mxu0 %v1335_v40 }
  0x35   : > { %593 = vmatmul.mubr.bf16.gmra.mxu1 %v1313_v36 }
  0xd2   : > { %v416_v43 = vpop.f32.mrf.mxu0 }
  0xd4   : > { %v1594_v47 = vpop.f32.mrf.mxu0 }
  0xd6   : > { %v422_v52 = vpop.f32.mrf.mxu0 }
  0xd8   : > { %v1601_v57 = vpop.f32.mrf.mxu0 }
  0xda   : > { %v428_v63 = vpop.f32.mrf.mxu0 }
  0xdc   : > { %v1613_v11 = vpop.f32.mrf.mxu0 }
  0xed   : > { %v584_v50 = vpop.f32.mrf.mxu1 }
  0xee   : > { %v585_v53 = vadd.f32 %v584_v50, %v455_v48 }
  0xef   : > { %v586_v51 = vpop.f32.mrf.mxu1 }
  0xf0   : > { %v1599_v54 = vadd.f32 %v586_v51, %v459_v49  ;;  %v601_v59 = vmul.f32 %v585_v53, %v416_v43 }
  0xf1   : > { %v588_v55 = vpop.f32.mrf.mxu1 }
  0xf2   : > { %v589_v56 = vadd.f32 %v588_v55, %v455_v48 }
  0xf3   : > { %v590_v58 = vpop.f32.mrf.mxu1 }
  0xf4   : > { %v602_v60 = vmul.f32 %v589_v56, %v422_v52  ;;  %v1603_v61 = vadd.f32 %v590_v58, %v459_v49 }
  0xf5   : > { %v594_v62 = vpop.f32.mrf.mxu1 }
  0xf6   : > { %v604_v0 = vpack.c.bf16 %v602_v60, %v601_v59  ;;  %v595_v1 = vadd.f32 %v594_v62, %v455_v48 }
  0xf7   : > { %v596_v2 = vpop.f32.mrf.mxu1 }
  0xf8   : > { %v1605_v4 = vadd.f32 %v596_v2, %v459_v49  ;;  %743 = vmatmul.mubr.bf16.vlgmr.msra.gmra.mxu0 %v604_v0  ;;  %v603_v5 = vmul.f32 %v595_v1, %v428_v63 }
  0xf9   : > { %v598_v6 = vpop.f32.mrf.mxu1  ;;  %752 = vmatprep.mubr.bf16.mxu0 %v1403_v3 }
  0xfa   : > { %v605_v8 = vpack.c.bf16 %v603_v5, %v603_v5  ;;  %v1340_v6 = vld [vmem:[%s1733_s5 + $0x28] sm:$0xff]  }
  0xfb   : > { %v599_v7 = vpop.f32.mrf.mxu1 }
  0xfc   : > { %v1341_v7 = vld [vmem:[%s1733_s5 + $0x20] sm:$0xff]  }
 0x100   : > { %753 = vmatmul.mubr.bf16.gmra.mxu0 %v605_v8  ;;  %v1342_v8 = vld [vmem:[%s1733_s5 + $0x18] sm:$0xff]  }
 0x1b8   : > { %v744_v13 = vpop.f32.mrf.mxu0 }
 0x1b9   : > { %v745_v14 = vadd.f32 %v744_v13, %v625_v10  ;;  %v1345_v13 = vld [vmem:[%s1733_s5] sm:$0xff]  }
 0x1ba   : > { %v746_v15 = vpop.f32.mrf.mxu0 }
 0x1bb   : > { %v747_v16 = vadd.f32 %v746_v15, %v629_v12  ;;  %761 = vadd.xlane.f32.xlu0 %v745_v14 }
 0x1bc   : > { %v748_v17 = vpop.f32.mrf.mxu0 }
 0x1bd   : > { %v749_v3 = vadd.f32 %v748_v17, %v625_v10  ;;  %827 = vadd.xlane.f32.xlu1 %v747_v16 }
 0x1be   : > { %v750_v18 = vpop.f32.mrf.mxu0 }
 0x1bf   : > { %v751_v19 = vadd.f32 %v750_v18, %v629_v12  ;;  %763 = vadd.xlane.f32.xlu0 %v749_v3 }
 0x1c0   : > { %v754_v20 = vpop.f32.mrf.mxu0 }
 0x1c1   : > { %v755_v21 = vadd.f32 %v754_v20, %v625_v10  ;;  %829 = vadd.xlane.f32.xlu1 %v751_v19  ;;  %v1343_v10 = vld [vmem:[%s1733_s5 + $0x10] sm:$0xff]  }
 0x1c2   : > { %v756_v22 = vpop.f32.mrf.mxu0 }
 0x1c3   : > { %v757_v23 = vadd.f32 %v756_v22, %v629_v12  ;;  %765 = vadd.xlane.f32.xlu0 %v755_v21  ;;  %v1344_v12 = vld [vmem:[%s1733_s5 + $0x8] sm:$0xff]  }
 0x1c4   : > { %v758_v24 = vpop.f32.mrf.mxu0 }
 0x1c5   : > { %831 = vadd.xlane.f32.xlu1 %v757_v23 }
 0x1c6   : > { %v759_v25 = vpop.f32.mrf.mxu0 }
 0x1c7   : > { %892 = vadd.xlane.f32.xlu0 %v1599_v54 }
 0x1c9   : > { %894 = vadd.xlane.f32.xlu1 %v1603_v61 }
 0x1cb   : > { %896 = vadd.xlane.f32.xlu0 %v1605_v4 }
 0x244   : > { %v762_v26 = vpop.xlane.xlu0 %761 }
 0x245   : > { %v768_v27 = vmul.f32 0.0078125, %v762_v26 }
 0x246   : > { %v828_v28 = vpop.xlane.xlu1 %827 }
 0x247   : > { %v1619_v29 = vsub.f32 %v745_v14, %v768_v27  ;;  %v833_v30 = vmul.f32 0.0078125, %v828_v28 }
 0x248   : > { %v764_v31 = vpop.xlane.xlu0 %763 }
 0x249   : > { %v1621_v32 = vsub.f32 %v747_v16, %v833_v30  ;;  %v769_v33 = vmul.f32 0.0078125, %v764_v31  ;;  %v774_v34 = vmul.f32 %v1619_v29, %v1619_v29  ;;  %v1685_v31 = vld [vmem:[%s1735_s7] sm:$0xff] }
 0x24a   : > { %v830_v35 = vpop.xlane.xlu1 %829 }
 0x24b   : > { %v1625_v36 = vsub.f32 %v749_v3, %v769_v33  ;;  %v834_v37 = vmul.f32 0.0078125, %v830_v35  ;;  %777 = vadd.xlane.f32.xlu1 %v774_v34  ;;  %v839_v41 = vmul.f32 %v1621_v32, %v1621_v32  ;;  %v798_v34 = vrot.slane %v1685_v31, %v1584_v44 }
 0x24c   : > { %v766_v38 = vpop.xlane.xlu0 %765  ;;  %v862_v35 = vsub.s32 2, %v1581_v42 }
 0x24d   : > { %v1627_v39 = vsub.f32 %v751_v19, %v834_v37  ;;  %v770_v40 = vmul.f32 0.0078125, %v766_v38  ;;  %v775_v43 = vmul.f32 %v1625_v36, %v1625_v36  ;;  %v805_v38 = vrot.slane %v1685_v31, %v1609_v9 }
 0x24e   : > { %v832_v46 = vpop.xlane.xlu1 %831 }
 0x24f   : > { %v1633_v48 = vsub.f32 %v755_v21, %v770_v40  ;;  %v835_v49 = vmul.f32 0.0078125, %v832_v46  ;;  %842 = vadd.xlane.f32.xlu1 %v839_v41  ;;  %779 = vadd.xlane.f32.xlu0 %v775_v43  ;;  %v840_v53 = vmul.f32 %v1627_v39, %v1627_v39  ;;  %v869_v41 = vsub.s32 3, %v1581_v42 }
 0x250   : > { %v893_v50 = vpop.xlane.xlu0 %892  ;;  %v863_v46 = vrot.slane %v1685_v31, %v862_v35 }
 0x251   : > { %v1635_v51 = vsub.f32 %v757_v23, %v835_v49  ;;  %v898_v52 = vmul.f32 0.0078125, %v893_v50  ;;  %v776_v55 = vmul.f32 %v1633_v48, %v1633_v48  ;;  %v870_v44 = vrot.slane %v1685_v31, %v869_v41 }
 0x252   : > { %v895_v56 = vpop.xlane.xlu1 %894 }
 0x253   : > { %v1642_v58 = vsub.f32 %v1599_v54, %v898_v52  ;;  %v899_v59 = vmul.f32 0.0078125, %v895_v56  ;;  %844 = vadd.xlane.f32.xlu0 %v840_v53  ;;  %781 = vadd.xlane.f32.xlu1 %v776_v55  ;;  %v841_v0 = vmul.f32 %v1635_v51, %v1635_v51 }
 0x254   : > { %v897_v60 = vpop.xlane.xlu0 %896 }
 0x255   : > { %v1645_v62 = vsub.f32 %v1603_v61, %v899_v59  ;;  %v900_v63 = vmul.f32 0.0078125, %v897_v60  ;;  %v904_v1 = vmul.f32 %v1642_v58, %v1642_v58  ;;  %v1338_v61 = vld [vmem:[%s1733_s5 + $0x38] sm:$0xff]  }
 0x256   : > { %1258 = vmatprep.subr.bf16.mxu1 %v1338_v61 }
 0x257   : > { %v1652_v2 = vsub.f32 %v1605_v4, %v900_v63  ;;  %846 = vadd.xlane.f32.xlu0 %v841_v0  ;;  %907 = vadd.xlane.f32.xlu1 %v904_v1  ;;  %v905_v54 = vmul.f32 %v1645_v62, %v1645_v62  ;;  %v1339_v4 = vld [vmem:[%s1733_s5 + $0x30] sm:$0xff]  }
 0x258   : > { %1259 = vmatpush3.bf16.msra.mxu1 %v1338_v61 }
 0x259   : > { %v906_v5 = vmul.f32 %v1652_v2, %v1652_v2  ;;  %1260 = vmatprep.subr.bf16.mxu1 %v1339_v4 }
 0x25b   : > { %909 = vadd.xlane.f32.xlu0 %v905_v54  ;;  %911 = vadd.xlane.f32.xlu1 %v906_v5 }
 0x25c   : > { %1261 = vmatpush3.bf16.msra.mxu1 %v1339_v4 }
 0x25d   : > { %1262 = vmatprep.subr.bf16.mxu1 %v1340_v6 }
 0x260   : > { %1263 = vmatpush3.bf16.msra.mxu1 %v1340_v6 }
 0x261   : > { %1264 = vmatprep.subr.bf16.mxu1 %v1341_v7 }
 0x264   : > { %1265 = vmatpush3.bf16.msra.mxu1 %v1341_v7 }
 0x265   : > { %1266 = vmatprep.subr.bf16.mxu1 %v1342_v8 }
 0x268   : > { %1267 = vmatpush3.bf16.msra.mxu1 %v1342_v8 }
 0x269   : > { %1268 = vmatprep.subr.bf16.mxu1 %v1343_v10 }
 0x26c   : > { %1269 = vmatpush3.bf16.msra.mxu1 %v1343_v10 }
 0x26d   : > { %1270 = vmatprep.subr.bf16.mxu1 %v1344_v12 }
 0x270   : > { %1271 = vmatpush3.bf16.msra.mxu1 %v1344_v12 }
 0x271   : > { %1272 = vmatprep.subr.bf16.mxu1 %v1345_v13 }
 0x274   : > { %1273 = vmatpush3.bf16.msra.mxu1 %v1345_v13 }
 0x2d4   : > { %v778_v14 = vpop.xlane.xlu1 %777 }
 0x2d5   : > { %v783_v15 = vmul.f32 0.0078125, %v778_v14 }
 0x2d7   : > { %v786_v16 = vadd.f32 1e-05, %v783_v15 }
 0x2d8   : > { %v843_v17 = vpop.xlane.xlu1 %842  ;;  %v780_v3 = vpop.xlane.xlu0 %779 }
 0x2d9   : > { %1346 = vrsqrt.f32 %v786_v16  ;;  %v848_v18 = vmul.f32 0.0078125, %v843_v17  ;;  %v784_v19 = vmul.f32 0.0078125, %v780_v3 }
 0x2db   : > { %v851_v20 = vadd.f32 1e-05, %v848_v18  ;;  %v787_v21 = vadd.f32 1e-05, %v784_v19 }
 0x2dc   : > { %v782_v22 = vpop.xlane.xlu1 %781  ;;  %v845_v23 = vpop.xlane.xlu0 %844 }
 0x2dd   : > { %1348 = vrsqrt.f32 %v851_v20  ;;  %v785_v24 = vmul.f32 0.0078125, %v782_v22  ;;  %v849_v25 = vmul.f32 0.0078125, %v845_v23 }
 0x2de   : > { %1350 = vrsqrt.f32 %v787_v21 }
 0x2df   : > { %v788_v26 = vadd.f32 1e-05, %v785_v24  ;;  %v852_v27 = vadd.f32 1e-05, %v849_v25 }
 0x2e0   : > { %v847_v28 = vpop.xlane.xlu0 %846  ;;  %v908_v1 = vpop.xlane.xlu1 %907 }
 0x2e1   : > { %1352 = vrsqrt.f32 %v788_v26  ;;  %v850_v30 = vmul.f32 0.0078125, %v847_v28  ;;  %v913_v8 = vmul.f32 0.0078125, %v908_v1 }
 0x2e2   : > { %1354 = vrsqrt.f32 %v852_v27 }
 0x2e3   : > { %v853_v33 = vadd.f32 1e-05, %v850_v30  ;;  %v916_v17 = vadd.f32 1e-05, %v913_v8 }
 0x2e4   : > { %v910_v61 = vpop.xlane.xlu0 %909  ;;  %v912_v15 = vpop.xlane.xlu1 %911 }
 0x2e5   : > { %1356 = vrsqrt.f32 %v853_v33  ;;  %v914_v12 = vmul.f32 0.0078125, %v910_v61  ;;  %v915_v19 = vmul.f32 0.0078125, %v912_v15 }
 0x2e6   : > { %v1347_v37 = vpop.eup %1346 }
 0x2e7   : > { %v792_v40 = vmul.f32 %v1347_v37, %v1619_v29  ;;  %v917_v3 = vadd.f32 1e-05, %v914_v12  ;;  %v918_v21 = vadd.f32 1e-05, %v915_v19  ;;  %v927_v37 = vsub.s32 4, %v1581_v42 }
 0x2e9   : > { %v799_v43 = vmul.f32 %v798_v34, %v792_v40 }
 0x2ea   : > { %v1349_v49 = vpop.eup %1348 }
 0x2eb   : > { %v1351_v50 = vpop.eup %1350  ;;  %v806_v52 = vadd.f32 %v805_v38, %v799_v43  ;;  %v857_v53 = vmul.f32 %v1349_v49, %v1621_v32  ;;  %v928_v43 = vrot.slane %v1685_v31, %v927_v37 }
 0x2ec   : > { %v793_v55 = vmul.f32 %v1351_v50, %v1625_v36  ;;  %v934_v50 = vsub.s32 5, %v1581_v42 }
 0x2ed   : > { %v1232_v56 = vmul.f32 -1.442695, %v806_v52  ;;  %v864_v9 = vmul.f32 %v863_v46, %v857_v53 }
 0x2ee   : > { %v1353_v59 = vpop.eup %1352  ;;  %v800_v29 = vmul.f32 %v798_v34, %v793_v55 }
 0x2ef   : > { %v1355_v60 = vpop.eup %1354  ;;  %v871_v63 = vadd.f32 %v870_v44, %v864_v9  ;;  %v794_v0 = vmul.f32 %v1353_v59, %v1633_v48  ;;  %1358 = vpow2.f32 %v1232_v56  ;;  %v935_v56 = vrot.slane %v1685_v31, %v934_v50 }
 0x2f0   : > { %v807_v54 = vadd.f32 %v805_v38, %v800_v29  ;;  %v858_v5 = vmul.f32 %v1355_v60, %v1627_v39 }
 0x2f1   : > { %v1235_v4 = vmul.f32 -1.442695, %v871_v63  ;;  %v801_v6 = vmul.f32 %v798_v34, %v794_v0 }
 0x2f2   : > { %v1233_v7 = vmul.f32 -1.442695, %v807_v54  ;;  %v865_v32 = vmul.f32 %v863_v46, %v858_v5  ;;  %v1357_v36 = vpop.eup %1356 }
 0x2f3   : > { %1360 = vpow2.f32 %v1235_v4  ;;  %v808_v10 = vadd.f32 %v805_v38, %v801_v6  ;;  %v859_v14 = vmul.f32 %v1357_v36, %v1635_v51 }
 0x2f4   : > { %1362 = vpow2.f32 %v1233_v7  ;;  %v872_v13 = vadd.f32 %v870_v44, %v865_v32 }
 0x2f5   : > { %v1234_v48 = vmul.f32 -1.442695, %v808_v10  ;;  %v866_v39 = vmul.f32 %v863_v46, %v859_v14 }
 0x2f6   : > { %v1236_v16 = vmul.f32 -1.442695, %v872_v13 }
 0x2f7   : > { %1364 = vpow2.f32 %v1234_v48  ;;  %v873_v18 = vadd.f32 %v870_v44, %v866_v39 }
 0x2f8   : > { %1366 = vpow2.f32 %v1236_v16 }
 0x2f9   : > { %1368 = vrsqrt.f32 %v916_v17  ;;  %v1237_v20 = vmul.f32 -1.442695, %v873_v18 }
 0x2fa   : > { %1370 = vrsqrt.f32 %v917_v3 }
 0x2fb   : > { %1372 = vpow2.f32 %v1237_v20 }
 0x2fc   : > { %v1359_v22 = vpop.eup %1358  ;;  %1374 = vrsqrt.f32 %v918_v21 }
 0x2fd   : > { %v818_v51 = vadd.f32 1.0, %v1359_v22 }
 0x300   : > { %v1361_v23 = vpop.eup %1360 }
 0x301   : > { %v1363_v24 = vpop.eup %1362  ;;  %v883_v25 = vadd.f32 1.0, %v1361_v23 }
 0x302   : > { %v819_v26 = vadd.f32 1.0, %v1363_v24 }
 0x303   : > { %1376 = vrcp.f32 %v883_v25 }
 0x304   : > { %v1365_v27 = vpop.eup %1364  ;;  %1378 = vrcp.f32 %v818_v51 }
 0x305   : > { %v1367_v28 = vpop.eup %1366  ;;  %v820_v30 = vadd.f32 1.0, %v1365_v27  ;;  %1380 = vrcp.f32 %v819_v26 }
 0x306   : > { %v884_v33 = vadd.f32 1.0, %v1367_v28  ;;  %v1369_v34 = vpop.eup %1368 }
 0x307   : > { %v1371_v38 = vpop.eup %1370  ;;  %v922_v46 = vmul.f32 %v1369_v34, %v1642_v58 }
 0x308   : > { %1382 = vrcp.f32 %v884_v33  ;;  %v1373_v40 = vpop.eup %1372  ;;  %v923_v49 = vmul.f32 %v1371_v38, %v1645_v62  ;;  %v1101_v38 = vsub.s32 6, %v1581_v42 }
 0x309   : > { %1384 = vrcp.f32 %v820_v30  ;;  %v885_v41 = vadd.f32 1.0, %v1373_v40  ;;  %v1375_v52 = vpop.eup %1374  ;;  %v929_v53 = vmul.f32 %v928_v43, %v922_v46  ;;  %v1108_v40 = vsub.s32 7, %v1581_v42 }
 0x30a   : > { %v924_v44 = vmul.f32 %v1375_v52, %v1652_v2  ;;  %v930_v55 = vmul.f32 %v928_v43, %v923_v49 }
 0x30b   : > { %1386 = vrcp.f32 %v885_v41  ;;  %v936_v60 = vadd.f32 %v935_v56, %v929_v53  ;;  %v1102_v41 = vrot.slane %v1685_v31, %v1101_v38  ;;  %v1109_v46 = vrot.slane %v1685_v31, %v1108_v40 }
 0x30c   : > { %v937_v63 = vadd.f32 %v935_v56, %v930_v55  ;;  %v931_v1 = vmul.f32 %v928_v43, %v924_v44 }
 0x30e   : > { %v938_v6 = vadd.f32 %v935_v56, %v931_v1 }
 0x310   : > { %v1377_v9 = vpop.eup %1376 }
 0x311   : > { %v1379_v59 = vpop.eup %1378  ;;  %v939_v0 = vmul.f32 %v1377_v9, %v1594_v47 }
 0x312   : > { %v1381_v29 = vpop.eup %1380  ;;  %v942_v54 = vmul.f32 %v1379_v59, %v936_v60 }
 0x313   : > { %v943_v5 = vmul.f32 %v1381_v29, %v937_v63 }
 0x314   : > { %v945_v4 = vadd.f32 %v942_v54, %v939_v0 }
 0x315   : > { %v1383_v58 = vpop.eup %1382 }
 0x316   : > { %v940_v62 = vmul.f32 %v1383_v58, %v1601_v57  ;;  %v1385_v61 = vpop.eup %1384  ;;  %v969_v57 = vrot.slane %v1589_v45, %v862_v35 }
 0x317   : > { %v944_v36 = vmul.f32 %v1385_v61, %v938_v6 }
 0x318   : > { %v946_v2 = vadd.f32 %v943_v5, %v940_v62  ;;  %v1387_v7 = vpop.eup %1386 }
 0x319   : > { %v941_v8 = vmul.f32 %v1387_v7, %v1613_v11 }
 0x31a   : > { %v948_v32 = vpack.c.bf16 %v946_v2, %v945_v4 }
 0x31b   : > { %v947_v10 = vadd.f32 %v944_v36, %v941_v8 }
 0x31c   : > { %1274 = vmatprep.mubr.bf16.mxu1 %v948_v32 }
 0x31d   : > { %v949_v12 = vpack.c.bf16 %v947_v10, %v947_v10 }
 0x31f   : > { %1275 = vmatmul.mubr.bf16.vlgmr.msra.gmra.mxu1 %v949_v12 }
 0x3df   : > { %v1276_v47 = vpop.f32.mrf.mxu1 }
 0x3e0   : > { %v1061_v16 = vadd.f32 %v1276_v47, %v969_v57 }
 0x3e1   : > { %v1052_v13 = vpop.f32.mrf.mxu1 }
 0x3e2   : > { %v1053_v14 = vadd.f32 %v1052_v13, %v969_v57 }
 0x3e3   : > { %v1277_v48 = vpop.f32.mrf.mxu1 }
 0x3e4   : > { %1066 = vadd.xlane.f32.xlu0 %v1053_v14 }
 0x3e5   : > { %v1055_v15 = vpop.f32.mrf.mxu1 }
 0x3e6   : > { %v1056_v17 = vadd.f32 %v1055_v15, %v969_v57 }
 0x3e8   : > { %1068 = vadd.xlane.f32.xlu1 %v1056_v17  ;;  %1070 = vadd.xlane.f32.xlu0 %v1061_v16 }
 0x46d   : > { %v1067_v11 = vpop.xlane.xlu0 %1066 }
 0x46e   : > { %v1072_v39 = vmul.f32 0.0078125, %v1067_v11 }
 0x470   : > { %v1075_v3 = vsub.f32 %v1053_v14, %v1072_v39 }
 0x471   : > { %v1069_v18 = vpop.xlane.xlu1 %1068  ;;  %v1071_v19 = vpop.xlane.xlu0 %1070 }
 0x472   : > { %v1073_v20 = vmul.f32 0.0078125, %v1069_v18  ;;  %v1074_v21 = vmul.f32 0.0078125, %v1071_v19  ;;  %v1078_v22 = vmul.f32 %v1075_v3, %v1075_v3 }
 0x474   : > { %v1076_v23 = vsub.f32 %v1056_v17, %v1073_v20  ;;  %v1077_v24 = vsub.f32 %v1061_v16, %v1074_v21  ;;  %1081 = vadd.xlane.f32.xlu1 %v1078_v22 }
 0x476   : > { %v1079_v45 = vmul.f32 %v1076_v23, %v1076_v23  ;;  %v1080_v35 = vmul.f32 %v1077_v24, %v1077_v24 }
 0x478   : > { %1083 = vadd.xlane.f32.xlu0 %v1079_v45  ;;  %1085 = vadd.xlane.f32.xlu1 %v1080_v35 }
 0x4fd   : > { %v1082_v51 = vpop.xlane.xlu1 %1081 }
 0x4fe   : > { %v1087_v25 = vmul.f32 0.0078125, %v1082_v51 }
 0x500   : > { %v1090_v26 = vadd.f32 1e-05, %v1087_v25 }
 0x501   : > { %v1086_v27 = vpop.xlane.xlu1 %1085  ;;  %v1084_v28 = vpop.xlane.xlu0 %1083 }
 0x502   : > { %1388 = vrsqrt.f32 %v1090_v26  ;;  %v1089_v30 = vmul.f32 0.0078125, %v1086_v27  ;;  %v1088_v33 = vmul.f32 0.0078125, %v1084_v28 }
 0x504   : > { %v1092_v34 = vadd.f32 1e-05, %v1089_v30  ;;  %v1091_v37 = vadd.f32 1e-05, %v1088_v33 }
 0x506   : > { %1390 = vrsqrt.f32 %v1092_v34 }
 0x507   : > { %1392 = vrsqrt.f32 %v1091_v37 }
 0x50f   : > { %v1389_v43 = vpop.eup %1388 }
 0x510   : > { %v1096_v49 = vmul.f32 %v1389_v43, %v1075_v3 }
 0x512   : > { %v1103_v50 = vmul.f32 %v1102_v41, %v1096_v49 }
 0x513   : > { %v1391_v52 = vpop.eup %1390 }
 0x514   : > { %v1393_v44 = vpop.eup %1392  ;;  %v1110_v53 = vadd.f32 %v1109_v46, %v1103_v50  ;;  %v1098_v55 = vmul.f32 %v1391_v52, %v1077_v24 }
 0x515   : > { %v1097_v56 = vmul.f32 %v1393_v44, %v1076_v23 }
 0x516   : > { %v1113_v9 = vmax.f32 %v1110_v53, 0.0  ;;  %v1105_v59 = vmul.f32 %v1102_v41, %v1098_v55 }
 0x517   : > { %v1104_v42 = vmul.f32 %v1102_v41, %v1097_v56 }
 0x518   : > { %1116 = vst [vmem:[%s329_s15] sm:$0xff] %v1113_v9  ;;  %v1112_v29 = vadd.f32 %v1109_v46, %v1105_v59 }
 0x519   : > { %v1111_v60 = vadd.f32 %v1109_v46, %v1104_v42 }
 0x51a   : > { %v1115_v63 = vmax.f32 %v1112_v29, 0.0 }
 0x51b   : > { %v1114_v31 = vmax.f32 %v1111_v60, 0.0 }
 0x51c   : > { %1118 = vst [vmem:[%s329_s15 + $0x10] sm:$0xff] %v1115_v63 }
 0x51d   : > { %1117 = vst [vmem:[%s329_s15 + $0x8] sm:$0xff] %v1114_v31 }
 0x51e PF: > { %s18_s27 = sadd.s32 1, %s1400_s27  }
 0x51f   : > { %p15_p4 = scmp.ge.s32.totalorder %s18_s27, 4  }
 0x521   :  { %17 = sbr.rel (!%p15_p4) target bundleno = 1 (0x1), region = 85 }

</bundles_post_ra>
